<compile_context>
chip_gen: v7x
topology: tpu7x:2x2x1
jax: 0.10.0
libtpu: 0.0.40
codegen_flags: <defaults>
</compile_context>

<pallas_src>
import functools

import jax
import jax.numpy as jnp
from jax.experimental import pallas as pl
from jax.experimental.pallas import tpu as pltpu

_LANES = 128
_BLOCK_BYTES = 8 * 1024 * 1024  # ~8 MiB per block (per buffer)


def _leaky_relu(v, slope):
    return jnp.where(v >= 0, v, slope * v)


def _jnp_leaky_hard_sigmoid(x, slope):
    # Reference (mirrors the PyTorch module exactly).
    return _leaky_relu(1.0 - _leaky_relu(1.0 - x, slope), slope)


def _num_tensorcores() -> int:
    """Best-effort TensorCore count (2 on v7x, 1 on v5e/v6e). Safe fallback: 1."""
    try:
        info = pltpu.get_tpu_info()
        for attr in ("num_cores", "core_count", "num_tensorcores"):
            v = getattr(info, attr, None)
            if isinstance(v, int) and v > 0:
                return v
    except Exception:
        pass
    return 1


def _leaky_hard_sigmoid_kernel(x_ref, o_ref, *, slope):
    x = x_ref[...]
    if 0.0 <= slope <= 1.0:
        # Simplified form (identical piecewise for slope in [0, 1]):
        c = jnp.clip(x, 0.0, 1.0)
        y = c + slope * (x - c)
    else:
        # Fall back to the literal composition for exotic slopes.
        y = _leaky_relu(1.0 - _leaky_relu(1.0 - x, slope), slope)
    o_ref[...] = y.astype(o_ref.dtype)


@functools.partial(jax.jit, static_argnames=("slope", "block_bytes"))
def _leaky_hard_sigmoid_impl(x, slope, block_bytes):
    orig_shape = x.shape
    orig_dtype = x.dtype
    total = x.size

    if total == 0:
        return x

    itemsize = jnp.dtype(orig_dtype).itemsize
    # Sublane multiple for packed dtypes: 8 (f32), 16 (bf16), 32 (int8/fp8).
    sublane = max(8, 32 // itemsize)

    # Flatten + pad (< 128 elems) to a lane-dense slab; fuses under jit.
    x_flat = jnp.ravel(x)
    pad = (-total) % _LANES
    if pad:
        x_flat = jnp.pad(x_flat, (0, pad))
    rows = x_flat.size // _LANES
    x2d = x_flat.reshape(rows, _LANES)

    # --- dtype-aware, byte-targeted tile-row selection ---------------------
    block_rows = max(sublane, block_bytes // (_LANES * itemsize))
    if rows < sublane:
        tile_rows = rows  # full-extent block is allowed for tiny inputs
    else:
        tile_rows = min(block_rows, (rows // sublane) * sublane)
        ntc = _num_tensorcores()
        if ntc > 1 and rows >= ntc * sublane:
            # On multi-TC chips (v7x) make sure both cores get byte-balanced
            # work when the tensor would otherwise fit in < ntc blocks.
            if pl.cdiv(rows, tile_rows) < ntc:
                tile_rows = ((pl.cdiv(rows, ntc) + sublane - 1) // sublane) * sublane
    grid = (pl.cdiv(rows, tile_rows),)  # ragged last block handled by Pallas

    kernel = functools.partial(_leaky_hard_sigmoid_kernel, slope=slope)
    n_elems = rows * _LANES

    out2d = pl.pallas_call(
        kernel,
        out_shape=jax.ShapeDtypeStruct((rows, _LANES), orig_dtype),
        grid_spec=pltpu.PrefetchScalarGridSpec(
            num_scalar_prefetch=0,
            grid=grid,
            in_specs=[pl.BlockSpec((tile_rows, _LANES), lambda i: (i, 0))],
            out_specs=pl.BlockSpec((tile_rows, _LANES), lambda i: (i, 0)),
        ),
        compiler_params=pltpu.CompilerParams(
            dimension_semantics=("parallel",),
            # 2x8 MiB in + 2x8 MiB out double-buffers = 32 MiB (+ headroom).
            # Explicit limit is required on v5e (16 MiB scoped default) and
            # stays safely below v7x's 64 MiB physical VMEM.
            vmem_limit_bytes=48 * 1024 * 1024,
        ),
        cost_estimate=pl.CostEstimate(
            flops=5 * n_elems,
            bytes_accessed=2 * n_elems * itemsize,
            transcendentals=0,
        ),
    )(x2d)

    out_flat = out2d.reshape(-1)
    if pad:
        out_flat = out_flat[:total]  # fuses under jit
    return out_flat.reshape(orig_shape)


def leaky_hard_sigmoid(x, slope: float = 0.01):
    """Applies LeakyHardSigmoid elementwise to an arbitrary-shaped array."""
    return _leaky_hard_sigmoid_impl(x, slope=float(slope), block_bytes=_BLOCK_BYTES)


if __name__ == "__main__":
    key = jax.random.PRNGKey(0)

    # Small NCHW input consistent with typical use of this activation.
    x = jax.random.normal(key, (2, 4, 16, 16), dtype=jnp.float32) * 2.0
    y = jax.block_until_ready(leaky_hard_sigmoid(x, slope=0.01))
    y_ref = _jnp_leaky_hard_sigmoid(x, 0.01)
    assert y.shape == x.shape and y.dtype == x.dtype
    assert jnp.allclose(y, y_ref, atol=1e-6, rtol=1e-6)

    # Unaligned-size input to exercise the pad + slice-back path.
    x2 = jax.random.normal(jax.random.PRNGKey(1), (2, 3, 37, 5), jnp.float32)
    y2 = jax.block_until_ready(leaky_hard_sigmoid(x2, slope=0.01))
    assert jnp.allclose(y2, _jnp_leaky_hard_sigmoid(x2, 0.01), atol=1e-6, rtol=1e-6)

    # bf16 path (dtype-aware block sizing / sublane rounding).
    x3 = jax.random.normal(jax.random.PRNGKey(2), (4, 8, 32), jnp.bfloat16)
    y3 = jax.block_until_ready(leaky_hard_sigmoid(x3, slope=0.01))
    assert y3.dtype == jnp.bfloat16
    assert jnp.allclose(
        y3.astype(jnp.float32),
        _jnp_leaky_hard_sigmoid(x3, 0.01).astype(jnp.float32),
        atol=1e-2, rtol=1e-2,
    )

    print("KERNEL_OK")
</pallas_src>

<mosaic_0001>
module attributes {stable_mosaic.version = 11 : i64} {
  func.func @_leaky_hard_sigmoid_kernel(%arg0: i32, %arg1: memref<16x128xf32, #tpu.memory_space<vmem>>, %arg2: memref<16x128xf32, #tpu.memory_space<vmem>>) attributes {dimension_semantics = [#tpu.dimension_semantics<parallel>], iteration_bounds = array<i64: 1>, scalar_prefetch = 0 : i64, scratch_operands = 0 : i64, tpu.core_type = #tpu.core_type<tc>, window_params = [{transform_indices = @transform_0, window_bounds = array<i64: 16, 128>}, {transform_indices = @transform_1, window_bounds = array<i64: 16, 128>}]} {
    %c0 = arith.constant 0 : index
    %c0_0 = arith.constant 0 : index
    %0 = vector.load %arg1[%c0, %c0_0] : memref<16x128xf32, #tpu.memory_space<vmem>>, vector<16x128xf32>
    %cst = arith.constant 0.000000e+00 : f32
    %cst_1 = arith.constant 1.000000e+00 : f32
    %1 = vector.broadcast %cst : f32 to vector<16x128xf32>
    %2 = arith.maximumf %1, %0 : vector<16x128xf32>
    %3 = vector.broadcast %cst_1 : f32 to vector<16x128xf32>
    %4 = arith.minimumf %3, %2 : vector<16x128xf32>
    %5 = arith.subf %0, %4 : vector<16x128xf32>
    %cst_2 = arith.constant 0.00999999977 : f32
    %6 = vector.broadcast %cst_2 : f32 to vector<16x128xf32>
    %7 = arith.mulf %6, %5 : vector<16x128xf32>
    %8 = arith.addf %4, %7 : vector<16x128xf32>
    %c0_3 = arith.constant 0 : index
    %c0_4 = arith.constant 0 : index
    %9 = vector.load %arg2[%c0_3, %c0_4] : memref<16x128xf32, #tpu.memory_space<vmem>>, vector<16x128xf32>
    tpu.vector_store %arg2[%c0_3, %c0_4], %8 {strides = array<i32>} : memref<16x128xf32, #tpu.memory_space<vmem>>, vector<16x128xf32>,
    return
  }
  func.func @transform_0(%arg0: i32) -> (i32, i32) {
    %c0_i32 = arith.constant 0 : i32
    %c0_i32_0 = arith.constant 0 : i32
    return %arg0, %c0_i32 : i32, i32
  }
  func.func @transform_1(%arg0: i32) -> (i32, i32) {
    %c0_i32 = arith.constant 0 : i32
    %c0_i32_0 = arith.constant 0 : i32
    return %arg0, %c0_i32 : i32, i32
  }
}

</mosaic_0001>

<bundles_post_ra>
// kernel: _leaky_hard_sigmoid_impl.1
= control target key start
LH: loop header
LB: loop body
LE: loop exit
PB: predicated region body
PF: predicated region fallthrough
CT: control target
= control target key end

     0   :  { %s48_s0 = inlined_call_operand.vmem [shape: f32[16,128], index: 0, kind: input, shape index: {}]   ;;  %s49_s1 = inlined_call_operand.vmem [shape: f32[16,128], index: 1, kind: output, shape index: {}]  }
   0x1   :  { %v8_v0 = vld [vmem:[%s48_s0] sm:$0xff]  ;;  %v9_v1 = vld [vmem:[%s48_s0 + $0x8] sm:$0xff] }
   0x2   :  { %v10_v2 = vmax.f32 %v8_v0, 0.0  ;;  %v11_v3 = vmax.f32 %v9_v1, 0.0 }
   0x4   :  { %v12_v4 = vmin.f32 %v10_v2, 1.0  ;;  %v13_v5 = vmin.f32 %v11_v3, 1.0 }
   0x6   :  { %v14_v6 = vsub.f32 %v8_v0, %v12_v4  ;;  %v15_v7 = vsub.f32 %v9_v1, %v13_v5 }
   0x8   :  { %v16_v8 = vmul.f32 0.01, %v14_v6  ;;  %v17_v9 = vmul.f32 0.01, %v15_v7 }
   0xa   :  { %v18_v10 = vadd.f32 %v16_v8, %v12_v4  ;;  %v19_v11 = vadd.f32 %v17_v9, %v13_v5 }
   0xc   :  { %20 = vst [vmem:[%s49_s1] sm:$0xff] %v18_v10  ;;  %21 = vst [vmem:[%s49_s1 + $0x8] sm:$0xff] %v19_v11 }

</bundles_post_ra>
